<compile_context>
chip_gen: v7x
topology: tpu7x:2x2x1
jax: 0.10.0
libtpu: 0.0.40
codegen_flags: <defaults>
</compile_context>

<pallas_src>
import jax
import jax.numpy as jnp
from jax.experimental import pallas as pl
from jax.experimental.pallas import tpu as pltpu


def cross_entropy_loss_2d(outputs, targets, *, tile_pixels=65536):
    """outputs: (N, C, H, W) float logits; targets: (N, H, W) int labels (-1 = ignore).

    Returns a float32 scalar equal to
    torch.nn.CrossEntropyLoss(ignore_index=-1)(outputs, targets).
    """
    n, c, h, w = outputs.shape
    p = h * w

    # Pure reshapes of the native NCHW layout -- no transpose, no dtype upcast,
    # and (crucially) no HBM-copying pad of the logits to a tile multiple.
    logits = outputs.reshape(n, c, p)
    tgt = targets.reshape(n, 1, p).astype(jnp.int32)

    # Only for degenerate tiny inputs: guarantee at least one full 128-lane tile.
    p_arr = p
    if p < 128:
        pad = 128 - p
        logits = jnp.pad(logits, ((0, 0), (0, 0), (0, pad)))
        tgt = jnp.pad(tgt, ((0, 0), (0, 0), (0, pad)), constant_values=-1)
        p_arr = 128

    # ---- Tile-size selection ---------------------------------------------------
    try:
        vmem_cap = int(pltpu.get_tpu_info().vmem_capacity_bytes)
        if vmem_cap <= 0:
            vmem_cap = 64 * 1024 * 1024
    except Exception:
        vmem_cap = 64 * 1024 * 1024  # conservative (v7x-sized) fallback

    itemsize = jnp.dtype(logits.dtype).itemsize
    # Per-buffer budget for the (double-buffered) logits block: ~8 MiB on v7x
    # (64 MiB VMEM), up to 12 MiB on v5e/v6e (128 MiB VMEM).
    budget = min(12 * 1024 * 1024, max(vmem_cap // 8, 2 * 1024 * 1024))
    max_tw_mem = max(128, (budget // max(1, c * itemsize)) // 128 * 128)

    u = pl.cdiv(p_arr, 128)                       # pixel extent in 128-lane units
    tw_units = max(1, min(tile_pixels // 128, max_tw_mem // 128, u))
    n_tiles = pl.cdiv(u, tw_units)
    # Prefer an even tile count so the 2-way pixel split (v7x megacore) never
    # duplicates a tile; shrinking the tile slightly is free (still lane-dense).
    if n_tiles > 1 and n_tiles % 2 == 1:
        cand = max(1, pl.cdiv(u, n_tiles + 1))
        if pl.cdiv(u, cand) % 2 == 0:
            tw_units = cand
            n_tiles = pl.cdiv(u, cand)
    tw = tw_units * 128

    n_split = 2 if n_tiles % 2 == 0 else 1
    tiles_per_split = n_tiles // n_split

    # ---- VMEM limit (leave headroom; v7x only has 64 MiB physical) ---------------
    vmem_need = (2 * c * tw * itemsize        # double-buffered logits block
                 + 2 * 1 * tw * 4             # double-buffered targets block
                 + 8 * tw * 4                 # loss accumulator (sublane-padded)
                 + max(c, 8) * tw * 4         # hoisted class-index iota scratch
                 + (2 << 20))                 # outputs + slack
    vmem_limit = int(max(32 * 1024 * 1024,
                         min(vmem_need + (8 << 20), 3 * vmem_cap // 4)))

    n_pixels = p  # real (unpadded) pixel bound used by the in-kernel lane mask

    def kernel(logits_ref, tgt_ref, sum_ref, loss_acc, cls_scr):
        s = pl.program_id(1)
        j = pl.program_id(2)

        @pl.when(j == 0)
        def _():
            loss_acc[...] = jnp.zeros_like(loss_acc)
            # Hoisted class-index iota: materialized once per reduction sweep and
            # reloaded (cheap vld) every pixel tile instead of re-materialized.
            cls_scr[...] = jax.lax.broadcasted_iota(jnp.int32, cls_scr.shape, 0)

        x = logits_ref[...].astype(jnp.float32)            # (C, TW) f32 in-register
        t = tgt_ref[...]                                   # (1, TW) int32

        # Numerically-stable logsumexp over the class (sublane) axis.
        # TODO(synk): in the bf16/VALU-bound regime a single-pass cast into an f32
        # VMEM scratch could avoid repeated bf16->f32 casts; verify in bundle dump.
        m = jnp.max(x, axis=0, keepdims=True)              # (1, TW)
        lse = m + jnp.log(jnp.sum(jnp.exp(x - m), axis=0, keepdims=True))

        # Fused one-hot gather of the target-class logit (no explicit one-hot tensor).
        # TODO(synk): targets >= C (invalid but != -1) silently yield loss = lse
        # instead of raising, unlike PyTorch which asserts.
        tgt_logit = jnp.sum(jnp.where(cls_scr[...] == t, x, 0.0),
                            axis=0, keepdims=True)         # (1, TW)

        # Lane validity: inside the real pixel range (masks the ragged tail tile,
        # whose out-of-bounds lanes hold unspecified data) AND not ignore_index.
        gt = s * tiles_per_split + j                       # global pixel-tile index
        lane = jax.lax.broadcasted_iota(jnp.int32, t.shape, 1)
        in_bounds = (gt * tw + lane) < n_pixels
        valid = jnp.logical_and(in_bounds, t != -1)

        loss_acc[...] += jnp.where(valid, lse - tgt_logit, 0.0)

        @pl.when(j == pl.num_programs(2) - 1)
        def _():
            sum_ref[...] = jnp.sum(loss_acc[...], keepdims=True)   # (1, 1) f32

    grid = (n, n_split, tiles_per_split)

    loss_sum = pl.pallas_call(
        kernel,
        out_shape=jax.ShapeDtypeStruct((n * n_split, 1, 1), jnp.float32),
        grid_spec=pltpu.PrefetchScalarGridSpec(
            num_scalar_prefetch=0,
            grid=grid,
            in_specs=[
                pl.BlockSpec((None, c, tw),
                             lambda i, s, j: (i, 0, s * tiles_per_split + j)),
                pl.BlockSpec((None, 1, tw),
                             lambda i, s, j: (i, 0, s * tiles_per_split + j)),
            ],
            out_specs=pl.BlockSpec((None, 1, 1),
                                   lambda i, s, j: (i * n_split + s, 0, 0)),
            scratch_shapes=[
                pltpu.VMEM((1, tw), jnp.float32),   # per-(image, split) loss accumulator
                pltpu.VMEM((c, tw), jnp.int32),     # hoisted class-index iota
            ],
        ),
        compiler_params=pltpu.CompilerParams(
            # Image axis and pixel-half axis are independent partial sums
            # (megacore-splittable on v7x); tile axis is the sequential reduction.
            dimension_semantics=("parallel", "parallel", "arbitrary"),
            vmem_limit_bytes=vmem_limit,
        ),
    )(logits, tgt)

    total = jnp.sum(loss_sum)
    # Valid-pixel count: trivial XLA reduction over the tiny targets tensor.
    count = jnp.sum(targets != -1).astype(jnp.float32)
    # Mean over non-ignored pixels (NaN if there are none, matching PyTorch).
    return (total / count).astype(jnp.float32)


class CrossEntropyLoss2d:
    """JAX/Pallas mirror of the PyTorch module (no learnable params)."""

    def __init__(self, weight=None):
        # The reference module ignores `weight` (it never passes it to CrossEntropyLoss).
        del weight

    def __call__(self, outputs, targets):
        return cross_entropy_loss_2d(outputs, targets)


def _reference_loss(outputs, targets):
    """Pure-JAX reference for a quick correctness check."""
    n, c, h, w = outputs.shape
    logits = jnp.transpose(outputs, (0, 2, 3, 1)).reshape(-1, c).astype(jnp.float32)
    t = targets.reshape(-1).astype(jnp.int32)
    valid = t != -1
    lse = jax.scipy.special.logsumexp(logits, axis=-1)
    tgt_logit = jnp.take_along_axis(
        logits, jnp.clip(t, 0, c - 1)[:, None], axis=-1
    )[:, 0]
    per = jnp.where(valid, lse - tgt_logit, 0.0)
    return jnp.sum(per) / jnp.sum(valid.astype(jnp.float32))


if __name__ == "__main__":
    key = jax.random.PRNGKey(0)
    k1, k2, k3, k4 = jax.random.split(key, 4)

    loss_fn = CrossEntropyLoss2d()

    # Test 1: small shapes implied by the module (exactly tileable, single tile).
    N, C, H, W = 2, 4, 16, 16
    outputs = jax.random.normal(k1, (N, C, H, W), dtype=jnp.float32)
    targets = jax.random.randint(k2, (N, H, W), minval=-1, maxval=C, dtype=jnp.int32)
    loss = loss_fn(outputs, targets)
    jax.block_until_ready(loss)
    ref = _reference_loss(outputs, targets)
    assert jnp.allclose(loss, ref, rtol=1e-5, atol=1e-5), (loss, ref)

    # Test 2: ragged pixel count + forced small tile -> exercises the in-kernel
    # tail-tile mask and the 2-way pixel split, with no wrapper-side padding.
    N2, C2, H2, W2 = 1, 4, 16, 24            # p = 384, tw forced to 256 -> 2 tiles
    outputs2 = jax.random.normal(k3, (N2, C2, H2, W2), dtype=jnp.float32)
    targets2 = jax.random.randint(k4, (N2, H2, W2), minval=-1, maxval=C2, dtype=jnp.int32)
    loss2 = cross_entropy_loss_2d(outputs2, targets2, tile_pixels=256)
    jax.block_until_ready(loss2)
    ref2 = _reference_loss(outputs2, targets2)
    assert jnp.allclose(loss2, ref2, rtol=1e-5, atol=1e-5), (loss2, ref2)

    print("KERNEL_OK")
</pallas_src>

<mosaic_0001>
module attributes {stable_mosaic.version = 11 : i64} {
  func.func @kernel(%arg0: i32, %arg1: i32, %arg2: i32, %arg3: memref<1x4x256xf32, #tpu.memory_space<vmem>>, %arg4: memref<1x1x256xi32, #tpu.memory_space<vmem>>, %arg5: memref<1x1x1xf32, #tpu.memory_space<vmem>>, %arg6: memref<1x256xf32, #tpu.memory_space<vmem>>, %arg7: memref<4x256xi32, #tpu.memory_space<vmem>>) attributes {dimension_semantics = [#tpu.dimension_semantics<parallel>, #tpu.dimension_semantics<parallel>, #tpu.dimension_semantics<arbitrary>], iteration_bounds = array<i64: 2, 1, 1>, scalar_prefetch = 0 : i64, scratch_operands = 2 : i64, tpu.core_type = #tpu.core_type<tc>, window_params = [{transform_indices = @transform_0, window_bounds = array<i64: 1, 4, 256>}, {transform_indices = @transform_1, window_bounds = array<i64: 1, 1, 256>}, {transform_indices = @transform_2, window_bounds = array<i64: 1, 1, 1>}]} {
    %c0_i32 = arith.constant 0 : i32
    %0 = arith.cmpi eq, %arg2, %c0_i32 : i32
    %1 = arith.extui %0 : i1 to i32
    %c0_i32_0 = arith.constant 0 : i32
    %2 = arith.cmpi ne, %1, %c0_i32_0 : i32
    scf.if %2 {
      %cst_19 = arith.constant 0.000000e+00 : f32
      %43 = vector.broadcast %cst_19 : f32 to vector<1x256xf32>
      %c0_20 = arith.constant 0 : index
      %c0_21 = arith.constant 0 : index
      %44 = vector.load %arg6[%c0_20, %c0_21] : memref<1x256xf32, #tpu.memory_space<vmem>>, vector<1x256xf32>
      tpu.vector_store %arg6[%c0_20, %c0_21], %43 {strides = array<i32>} : memref<1x256xf32, #tpu.memory_space<vmem>>, vector<1x256xf32>,
      %45 = tpu.iota {dimensions = array<i32: 0>} : vector<4x256xi32>
      %c0_22 = arith.constant 0 : index
      %c0_23 = arith.constant 0 : index
      %46 = vector.load %arg7[%c0_22, %c0_23] : memref<4x256xi32, #tpu.memory_space<vmem>>, vector<4x256xi32>
      tpu.vector_store %arg7[%c0_22, %c0_23], %45 {strides = array<i32>} : memref<4x256xi32, #tpu.memory_space<vmem>>, vector<4x256xi32>,
    } else {
    }
    %c0 = arith.constant 0 : index
    %c0_1 = arith.constant 0 : index
    %c0_2 = arith.constant 0 : index
    %3 = vector.load %arg3[%c0, %c0_1, %c0_2] : memref<1x4x256xf32, #tpu.memory_space<vmem>>, vector<1x4x256xf32>
    %4 = vector.shape_cast %3 : vector<1x4x256xf32> to vector<4x256xf32>
    %c0_3 = arith.constant 0 : index
    %c0_4 = arith.constant 0 : index
    %c0_5 = arith.constant 0 : index
    %5 = vector.load %arg4[%c0_3, %c0_4, %c0_5] : memref<1x1x256xi32, #tpu.memory_space<vmem>>, vector<1x1x256xi32>
    %6 = vector.shape_cast %5 : vector<1x1x256xi32> to vector<1x256xi32>
    %cst = arith.constant dense<0xFF800000> : vector<256xf32>
    %7 = vector.multi_reduction <maximumf>, %4, %cst [0] : vector<4x256xf32> to vector<256xf32>
    %8 = vector.shape_cast %7 : vector<256xf32> to vector<1x256xf32>
    %9 = vector.broadcast %8 : vector<1x256xf32> to vector<4x256xf32>
    %10 = arith.subf %4, %9 : vector<4x256xf32>
    %11 = math.exp %10 : vector<4x256xf32>
    %cst_6 = arith.constant dense<0.000000e+00> : vector<256xf32>
    %12 = vector.multi_reduction <add>, %11, %cst_6 [0] : vector<4x256xf32> to vector<256xf32>
    %13 = vector.shape_cast %12 : vector<256xf32> to vector<1x256xf32>
    %14 = math.log %13 : vector<1x256xf32>
    %15 = arith.addf %8, %14 : vector<1x256xf32>
    %c0_7 = arith.constant 0 : index
    %c0_8 = arith.constant 0 : index
    %16 = vector.load %arg7[%c0_7, %c0_8] : memref<4x256xi32, #tpu.memory_space<vmem>>, vector<4x256xi32>
    %17 = vector.broadcast %6 : vector<1x256xi32> to vector<4x256xi32>
    %18 = arith.cmpi eq, %16, %17 : vector<4x256xi32>
    %cst_9 = arith.constant 0.000000e+00 : f32
    %19 = vector.broadcast %cst_9 : f32 to vector<4x256xf32>
    %20 = arith.select %18, %4, %19 : vector<4x256xi1>, vector<4x256xf32>
    %cst_10 = arith.constant dense<0.000000e+00> : vector<256xf32>
    %21 = vector.multi_reduction <add>, %20, %cst_10 [0] : vector<4x256xf32> to vector<256xf32>
    %22 = vector.shape_cast %21 : vector<256xf32> to vector<1x256xf32>
    %c1_i32 = arith.constant 1 : i32
    %23 = arith.muli %arg1, %c1_i32 : i32
    %24 = arith.addi %23, %arg2 : i32
    %25 = tpu.iota {dimensions = array<i32: 1>} : vector<1x256xi32>
    %c256_i32 = arith.constant 256 : i32
    %26 = arith.muli %24, %c256_i32 : i32
    %27 = vector.broadcast %26 : i32 to vector<1x256xi32>
    %28 = arith.addi %27, %25 : vector<1x256xi32>
    %c256_i32_11 = arith.constant 256 : i32
    %29 = vector.broadcast %c256_i32_11 : i32 to vector<1x256xi32>
    %30 = arith.cmpi slt, %28, %29 : vector<1x256xi32>
    %c-1_i32 = arith.constant -1 : i32
    %31 = vector.broadcast %c-1_i32 : i32 to vector<1x256xi32>
    %32 = arith.cmpi ne, %6, %31 : vector<1x256xi32>
    %33 = arith.andi %30, %32 : vector<1x256xi1>
    %c0_12 = arith.constant 0 : index
    %c0_13 = arith.constant 0 : index
    %34 = vector.load %arg6[%c0_12, %c0_13] : memref<1x256xf32, #tpu.memory_space<vmem>>, vector<1x256xf32>
    %35 = arith.subf %15, %22 : vector<1x256xf32>
    %cst_14 = arith.constant 0.000000e+00 : f32
    %36 = vector.broadcast %cst_14 : f32 to vector<1x256xf32>
    %37 = arith.select %33, %35, %36 : vector<1x256xi1>, vector<1x256xf32>
    %38 = arith.addf %34, %37 : vector<1x256xf32>
    %c0_15 = arith.constant 0 : index
    %c0_16 = arith.constant 0 : index
    %39 = vector.load %arg6[%c0_15, %c0_16] : memref<1x256xf32, #tpu.memory_space<vmem>>, vector<1x256xf32>
    tpu.vector_store %arg6[%c0_15, %c0_16], %38 {strides = array<i32>} : memref<1x256xf32, #tpu.memory_space<vmem>>, vector<1x256xf32>,
    %c0_i32_17 = arith.constant 0 : i32
    %40 = arith.cmpi eq, %arg2, %c0_i32_17 : i32
    %41 = arith.extui %40 : i1 to i32
    %c0_i32_18 = arith.constant 0 : i32
    %42 = arith.cmpi ne, %41, %c0_i32_18 : i32
    scf.if %42 {
      %c0_19 = arith.constant 0 : index
      %c0_20 = arith.constant 0 : index
      %43 = vector.load %arg6[%c0_19, %c0_20] : memref<1x256xf32, #tpu.memory_space<vmem>>, vector<1x256xf32>
      %44 = vector.shape_cast %43 : vector<1x256xf32> to vector<1x1x256xf32>
      %cst_21 = arith.constant dense<0.000000e+00> : vector<1xf32>
      %45 = vector.multi_reduction <add>, %44, %cst_21 [1, 2] : vector<1x1x256xf32> to vector<1xf32>
      %46 = vector.shape_cast %45 : vector<1xf32> to vector<1x1x1xf32>
      %47 = vector.extract %46[0, 0, 0] : f32 from vector<1x1x1xf32>
      %48 = vector.broadcast %47 : f32 to vector<1x1xf32>
      %c0_22 = arith.constant 0 : index
      %c0_23 = arith.constant 0 : index
      %c0_24 = arith.constant 0 : index
      %49 = vector.load %arg5[%c0_22, %c0_23, %c0_24] : memref<1x1x1xf32, #tpu.memory_space<vmem>>, vector<1x1x1xf32>
      %50 = vector.shape_cast %49 : vector<1x1x1xf32> to vector<1x1xf32>
      %51 = vector.shape_cast %48 : vector<1x1xf32> to vector<1x1x1xf32>
      tpu.vector_store %arg5[%c0_22, %c0_23, %c0_24], %51 {strides = array<i32>} : memref<1x1x1xf32, #tpu.memory_space<vmem>>, vector<1x1x1xf32>,
    } else {
    }
    return
  }
  func.func @transform_0(%arg0: i32, %arg1: i32, %arg2: i32) -> (i32, i32, i32) {
    %c1_i32 = arith.constant 1 : i32
    %0 = arith.muli %arg1, %c1_i32 : i32
    %1 = arith.addi %0, %arg2 : i32
    %c0_i32 = arith.constant 0 : i32
    %c0_i32_0 = arith.constant 0 : i32
    return %arg0, %c0_i32, %1 : i32, i32, i32
  }
  func.func @transform_1(%arg0: i32, %arg1: i32, %arg2: i32) -> (i32, i32, i32) {
    %c1_i32 = arith.constant 1 : i32
    %0 = arith.muli %arg1, %c1_i32 : i32
    %1 = arith.addi %0, %arg2 : i32
    %c0_i32 = arith.constant 0 : i32
    %c0_i32_0 = arith.constant 0 : i32
    return %arg0, %c0_i32, %1 : i32, i32, i32
  }
  func.func @transform_2(%arg0: i32, %arg1: i32, %arg2: i32) -> (i32, i32, i32) {
    %c1_i32 = arith.constant 1 : i32
    %0 = arith.muli %arg0, %c1_i32 : i32
    %1 = arith.addi %0, %arg1 : i32
    %c0_i32 = arith.constant 0 : i32
    %c0_i32_0 = arith.constant 0 : i32
    %c0_i32_1 = arith.constant 0 : i32
    return %1, %c0_i32, %c0_i32_0 : i32, i32, i32
  }
}

</mosaic_0001>

<bundles_post_ra>
// kernel: tpu_custom_call.1
= control target key start
LH: loop header
LB: loop body
LE: loop exit
PB: predicated region body
PF: predicated region fallthrough
CT: control target
= control target key end

     0   :  { %7 = vsyncpa [#allocation5], 0  ;;  %s948_s0 = inlined_call_operand.hbm [shape: f32[2,4,256], index: 0, kind: input, shape index: {}]   ;;  %s949_s1 = inlined_call_operand.hbm [shape: s32[2,1,256], index: 1, kind: input, shape index: {}]   ;;  %s950_s2 = inlined_call_operand.vmem [shape: f32[2,1,1], index: 2, kind: output, shape index: {}]  }
   0x1   :  { %9 = vsyncpa [#allocation5 + $0x1], 0 }
   0x2   :  { %10 = vsyncpa [#allocation7], 0 }
   0x3   :  { %12 = vsyncpa [#allocation7 + $0x1], 0  ;;  %s751_s9 = smov 0   ;;  %s753_s10 = smov 0  }
   0x4   :  { %s755_s11 = smov 0   ;;  %s757_s12 = smov 0  }
   0x5   :  { %s759_s13 = smov 0   ;;  %s761_s14 = smov 0  }
   0x6 LB: > { %s524_s15 = sadd.s32 4294967295, %s728_s14   ;;  %s37_s16 = sadd.s32 1, %s724_s13  ;;  %s728_s14 = sphi %s761_s14, %s18_s14   ;;  %s724_s13 = sphi %s759_s13, %s966_s13   ;;  %s720_s12 = sphi %s757_s12, %s965_s12   ;;  %s716_s11 = sphi %s755_s11, %s964_s11   ;;  %s712_s10 = sphi %s753_s10, %s963_s10   ;;  %s708_s9 = sphi %s751_s9, %s962_s9  }
   0x7   : > { %p39_p0 = scmp.ge.s32.totalorder %s37_s16, 2  ;;  %s48_s17 = sadd.s32 1, %s716_s11 }
   0x8   : > { %p55_p1 = scmp.ne.s32.totalorder %s716_s11, %s712_s10  ;;  %p56_p2 = scmp.eq.s32.totalorder %s728_s14, 0 }
   0x9   : > { %s968_s16 = smov (%p39_p0, %s37_s16), 0  ;;  %p61_p4 = scmp.ne.s32.totalorder %s712_s10, %s708_s9 }
   0xa   : > { %p787_p3 = por %p56_p2, %p55_p1  ;;  %s43_s19 = ssub.s32 %s724_s13, %s968_s16 }
   0xb   : > { %p62_p5 = scmp.eq.s32.totalorder %s524_s15, 0  ;;  %p46_p6 = scmp.eq.s32.totalorder %s43_s19, 0 }
   0xc   : > { %p554_p8 = scmp.lt.s32.totalorder %s728_s14, 2  ;;  %s803_s22 = sand.u32 1, %s716_s11  }
   0xd   : > { %p794_p7 = por %p62_p5, %p61_p4  ;;  %s539_s23 = sshll.u32 %s724_s13, 7 }
   0xe   : > { %s800_s21 = scalar_select %p46_p6, %s716_s11, %s48_s17  }
   0xf   : > { %s953_s20 = scalar_select %p794_p7, 1, 0 }
  0x10   : > { %s528_s24 = sshll.u32 %s803_s22, 3  ;;  %s810_s27 = scalar_lea.hbm %s948_s0, %s539_s23 }
  0x11   : > { %s147_s28 = scalar_lea.vmem [#allocation4], %s528_s24  ;;  %p814_p9 = pnand %p554_p8, %p787_p3 }
  0x12   : > { %s158_s29 = sshll.u32 %s147_s28, 4  ;;  %s144_s3 = scalar_lea.sflag [#allocation5], %s803_s22  ;;  %s818_s29 = int_to_ptr.vmem [resolvable:$true] %s158_s29 }
  0x13   : > { %s614_s4 = scalar_lea.hbm %s810_s27, 128  ;;  %p616_p13 = pneg %p814_p9 }
  0x14   : > { %p615_p12 = scmp.ne.s32.totalorder %s810_s27, %s614_s4  ;;  %s619_s7 = scalar_lea.hbm %s948_s0, 256 }
  0x15   : > { %p620_p2 = scmp.lt.u32.totalorder %s810_s27, %s948_s0  ;;  %p621_p3 = scmp.lt.u32.totalorder %s619_s7, %s614_s4 }
  0x16   : > { %p617_p0 = pnand %p616_p13, %p615_p12  ;;  %p623_p5 = scmp.lt.u32.totalorder %s614_s4, %s810_s27 }
  0x17   : > { %p622_p4 = por %p621_p3, %p620_p2 }
  0x18   : > { %p618_p1 = pneg %p617_p0 }
  0x19   : > { %p624_p6 = por %p623_p5, %p622_p4 }
  0x1b   : > { %p625_p8 = pnand %p624_p6, %p618_p1 }
  0x1d   : > { %628 = shalt.err (!%p625_p8)
}
  0x1e   : > { %s629_s15 = scalar_lea.vmem %s818_s29, 128  ;;  %s730_s17 = smov [#allocation4]  }
  0x1f   : > { %p630_p12 = scmp.ne.s32.totalorder %s818_s29, %s629_s15  ;;  %s634_s18 = sshll.u32 %s730_s17, 4  ;;  %s635_s18 = int_to_ptr.vmem [resolvable:$false] %s634_s18 }
  0x20   : > { %s636_s19 = scalar_lea.vmem %s635_s18, 256  ;;  %p637_p11 = scmp.lt.s32.totalorder %s818_s29, %s635_s18 }
  0x21   : > { %p632_p0 = pnand %p630_p12, %p616_p13  ;;  %p638_p2 = scmp.lt.s32.totalorder %s636_s19, %s629_s15 }
  0x23   : > { %p633_p10 = pneg %p632_p0  ;;  %p639_p3 = por %p638_p2, %p637_p11 }
  0x25   : > { %p640_p4 = pnand %p639_p3, %p633_p10 }
  0x27   : > { %643 = shalt.err (!%p640_p4)
}
  0x28   : > { %550 = dma.hbm_to_vmem [thread:$0]  (!%p814_p9), %s810_s27, 128, %s818_s29, %s144_s3  }
  0x29   : > { %p955_p1 = scmp.lt.s32.totalorder %s728_s14, 3  ;;  %p956_p5 = scmp.ge.s32.totalorder %s728_s14, 1 }
  0x2a   : > { %s531_s24 = sshll.u32 %s803_s22, 1  ;;  %s540_s25 = sshll.u32 %s724_s13, 5 }
  0x2b   : > { %p852_p6 = pnand %p956_p5, %p955_p1  ;;  %s861_s4 = scalar_lea.hbm %s949_s1, %s540_s25 }
  0x2c   : > { %s169_s5 = scalar_lea.vmem [#allocation6], %s531_s24  ;;  %s166_s27 = scalar_lea.sflag [#allocation7], %s803_s22 }
  0x2d   : > { %s957_s23 = scalar_select %p852_p6, 1, 0 }
  0x2e   : > { %s180_s6 = sshll.u32 %s169_s5, 4  ;;  %s644_s29 = scalar_lea.hbm %s861_s4, 32  ;;  %s181_s6 = int_to_ptr.vmem [resolvable:$true] %s180_s6 }
  0x2f   : > { %p645_p10 = scmp.ne.s32.totalorder %s861_s4, %s644_s29  ;;  %s649_s8 = scalar_lea.hbm %s949_s1, 64 }
  0x30   : > { %p650_p12 = scmp.lt.u32.totalorder %s861_s4, %s949_s1  ;;  %p651_p0 = scmp.lt.u32.totalorder %s649_s8, %s644_s29 }
  0x31   : > { %p647_p11 = pnand %p645_p10, %p616_p13  ;;  %p653_p3 = scmp.lt.u32.totalorder %s644_s29, %s861_s4 }
  0x32   : > { %p652_p2 = por %p651_p0, %p650_p12 }
  0x33   : > { %p648_p8 = pneg %p647_p11 }
  0x34   : > { %p654_p4 = por %p653_p3, %p652_p2 }
  0x36   : > { %p655_p1 = pnand %p654_p4, %p648_p8 }
  0x38   : > { %658 = shalt.err (!%p655_p1)
}
  0x39   : > { %s659_s22 = scalar_lea.vmem %s181_s6, 32  ;;  %s731_s17 = smov [#allocation6]  }
  0x3a   : > { %p660_p5 = scmp.ne.s32.totalorder %s181_s6, %s659_s22  ;;  %s664_s18 = sshll.u32 %s731_s17, 4  ;;  %s665_s18 = int_to_ptr.vmem [resolvable:$false] %s664_s18 }
  0x3b   : > { %s666_s19 = scalar_lea.vmem %s665_s18, 64  ;;  %p667_p7 = scmp.lt.s32.totalorder %s181_s6, %s665_s18 }
  0x3c   : > { %p662_p10 = pnand %p660_p5, %p616_p13  ;;  %p668_p6 = scmp.lt.s32.totalorder %s666_s19, %s659_s22 }
  0x3e   : > { %p663_p11 = pneg %p662_p10  ;;  %p669_p0 = por %p668_p6, %p667_p7 }
  0x40   : > { %p670_p12 = pnand %p669_p0, %p663_p11 }
  0x42   : > { %673 = shalt.err (!%p670_p12)
}
  0x43   : > { %553 = dma.hbm_to_vmem [thread:$0]  (!%p814_p9), %s861_s4, 32, %s181_s6, %s166_s27  }
  0x44   : > { %p958_p8 = scmp.ne.s32.totalorder %s957_s23, 0 }
  0x45   : > { %s191_s24 = sand.u32 (!%p958_p8), 1, %s712_s10   ;;  %p959_p13 = scmp.ne.s32.totalorder (!%p958_p8), %s953_s20, 0 }
  0x46   : > { %189 = sbr.rel (%p958_p8) target bundleno = 374 (0x176), region = 28  ;;  %s535_s25 = sshll.u32 (!%p958_p8), %s191_s24, 3 }
  0x47   : > { %s192_s26 = scalar_lea.sflag (!%p958_p8), [#allocation5], %s191_s24  ;;  %s195_s28 = scalar_lea.vmem (!%p958_p8), [#allocation4], %s535_s25 }
  0x4d   : > { %699 = dma.done.wait (%p959_p13), %s192_s26, 128  }
  0x4e   : > { %701 = vsyncadd (%p959_p13), %s192_s26, 4294967168  ;;  %s536_s5 = sshll.u32 %s191_s24, 1  ;;  %s201_s29 = scalar_lea.sflag [#allocation7], %s191_s24 }
  0x4f   : > { %s204_s30 = scalar_lea.vmem [#allocation6], %s536_s5 }
  0x50   : > { %703 = dma.done.wait (%p959_p13), %s201_s29, 32  }
  0x51   : > { %705 = vsyncadd (%p959_p13), %s201_s29, 4294967264  ;;  %v242_v0 = vlaneseq  ;;  %v732_v2 = vmov 0.0   ;;  %vm262_vm1 = vcmask 1043456   ;;  %v257_v3 = vld [vmem:[%s195_s28] sm:$0xff]  ;;  %v733_v15 = vmov 839922192  }
  0x52   : > { %v260_v4 = vcombine.high %v257_v3, %v257_v3  ;;  %v263_v5 = vsel %vm262_vm1, %v257_v3, -inf  ;;  %v250_v16 = vunpack.c.l.s4 %v733_v15  ;;  %v258_v25 = vld [vmem:[%s204_s30] sm:$0x3]  ;;  %v734_v63 = vmov 0   ;;  %p234_p7 = scmp.lt.s32.totalorder %s720_s12, 1 }
  0x53   : > { %vm894_vm0 = vcmp.lt.s32.totalorder %v242_v0, 256  ;;  %v264_v6 = vrot.slane %v263_v5, 4  ;;  %v902_v14 = vshrl.u32 %v242_v0, 7  ;;  %vm346_vm3 = vcmp.ne.s32.totalorder %v258_v25, 4294967295 }
  0x54   : > { %246 = vst.msk [vmem:[#allocation2] sm:$0x3] %vm894_vm0, %v732_v2  ;;  %v270_v7 = vsel %vm262_vm1, %v260_v4, -inf  ;;  %v251_v21 = vunpack.c.0.s8 %v250_v16  ;;  %v347_v0 = vsel %vm346_vm3, 1, %v734_v63  ;;  %vm404_vm6 = vcmask 1040384   ;;  %s970_s12 = smov (!%p234_p7, %s720_s12), 1 }
  0x55   : > { %v265_v8 = vmax.f32 %v263_v5, %v264_v6  ;;  %v271_v9 = vrot.slane %v270_v7, 4  ;;  %v905_v23 = vsub.s32 0, %v902_v14  ;;  %v908_v24 = vsub.s32 1, %v902_v14  ;;  %s236_s4 = scalar_lea.vmem %s950_s2, %s970_s12 }
  0x56   : > { %v254_v27 = vsub.s32 %v251_v21, %v902_v14  ;;  %v735_v5 = vmov 1966171168   ;;  %vm418_vm7 = vcmask 0  }
  0x57   : > { %v266_v10 = vrot.slane %v265_v8, 2  ;;  %v272_v11 = vmax.f32 %v270_v7, %v271_v9  ;;  %v311_v29 = vrot.slane %v258_v25, %v905_v23  ;;  %v315_v30 = vrot.slane %v258_v25, %v908_v24 }
  0x58   : > { %v255_v32 = vrot.slane %v902_v14, %v254_v27  ;;  %v351_v4 = vrot.slane %v347_v0, %v905_v23  ;;  %v369_v6 = vunpack.c.l.s4 %v735_v5 }
  0x59   : > { %v267_v12 = vmax.f32 %v265_v8, %v266_v10  ;;  %v273_v13 = vrot.slane %v272_v11, 2  ;;  %v316_v33 = vcombine.low %v311_v29, %v315_v30  ;;  %v355_v10 = vrot.slane %v347_v0, %v908_v24 }
  0x5a   : > { %vm356_vm4 = vcmp.ne.s32.totalorder %v351_v4, 0  ;;  %v370_v15 = vunpack.c.0.s8 %v369_v6 }
  0x5b   : > { %v268_v17 = vrot.slane %v267_v12, 1  ;;  %v274_v18 = vmax.f32 %v272_v11, %v273_v13  ;;  %vm317_vm2 = vcmp.eq.s32.totalorder %v255_v32, %v316_v33  ;;  %vm357_vm5 = vcmp.ne.s32.totalorder %v355_v10, 0 }
  0x5c   : > { %v318_v34 = vsel %vm317_vm2, %v257_v3, 0.0  ;;  %v373_v21 = vsub.s32 %v370_v15, %v902_v14 }
  0x5d   : > { %v269_v19 = vmax.f32 %v267_v12, %v268_v17  ;;  %v275_v20 = vrot.slane %v274_v18, 1  ;;  %v320_v36 = vcombine.high %v318_v34, %v318_v34  ;;  %v322_v40 = vsel %vm262_vm1, %v318_v34, 0.0 }
  0x5e   : > { %v323_v45 = vrot.slane %v322_v40, 4 }
  0x5f   : > { %v276_v22 = vmax.f32 %v274_v18, %v275_v20  ;;  %v329_v44 = vsel %vm262_vm1, %v320_v36, 0.0 }
  0x60   : > { %v330_v48 = vrot.slane %v329_v44, 4  ;;  %v324_v51 = vadd.f32 %v323_v45, %v322_v40 }
  0x61   : > { %v279_v26 = vcombine.low %v269_v19, %v276_v22 }
  0x62   : > { %v331_v54 = vadd.f32 %v330_v48, %v329_v44  ;;  %v325_v57 = vrot.slane %v324_v51, 2 }
  0x63   : > { %v281_v28 = vsub.f32 %v257_v3, %v279_v26 }
  0x64   : > { %v332_v59 = vrot.slane %v331_v54, 2  ;;  %v326_v60 = vadd.f32 %v325_v57, %v324_v51 }
  0x65   : > { %v282_v31 = vmul.f32 1.442695, %v281_v28  ;;  %v360_v28 = vld [vmem:[#allocation2] sm:$0x3] }
  0x66   : > { %v333_v61 = vadd.f32 %v332_v59, %v331_v54  ;;  %v327_v62 = vrot.slane %v326_v60, 1 }
  0x67   : > { %608 = vpow2.f32 %v282_v31 }
  0x68   : > { %v334_v2 = vrot.slane %v333_v61, 1  ;;  %v328_v8 = vadd.f32 %v327_v62, %v326_v60 }
  0x6a   : > { %v335_v13 = vadd.f32 %v334_v2, %v333_v61 }
  0x71   : > { %v609_v35 = vpop.eup %608 }
  0x72   : > { %v285_v37 = vcombine.high %v609_v35, %v609_v35  ;;  %v287_v38 = vsel %vm262_vm1, %v609_v35, 0.0 }
  0x73   : > { %v288_v39 = vrot.slane %v287_v38, 4 }
  0x74   : > { %v294_v41 = vsel %vm262_vm1, %v285_v37, 0.0 }
  0x75   : > { %v289_v42 = vadd.f32 %v288_v39, %v287_v38  ;;  %v295_v43 = vrot.slane %v294_v41, 4 }
  0x77   : > { %v290_v46 = vrot.slane %v289_v42, 2  ;;  %v296_v47 = vadd.f32 %v295_v43, %v294_v41 }
  0x79   : > { %v291_v49 = vadd.f32 %v290_v46, %v289_v42  ;;  %v297_v50 = vrot.slane %v296_v47, 2 }
  0x7b   : > { %v292_v52 = vrot.slane %v291_v49, 1  ;;  %v298_v53 = vadd.f32 %v297_v50, %v296_v47 }
  0x7d   : > { %v293_v55 = vadd.f32 %v292_v52, %v291_v49  ;;  %v299_v56 = vrot.slane %v298_v53, 1 }
  0x7f   : > { %v300_v58 = vadd.f32 %v299_v56, %v298_v53  ;;  %610 = vlog2.f32 %v293_v55 }
  0x81   : > { %612 = vlog2.f32 %v300_v58 }
  0x89   : > { %v611_v3 = vpop.eup %610 }
  0x8a   : > { %v302_v7 = vmul.f32 0.6931472, %v611_v3 }
  0x8b   : > { %v613_v9 = vpop.eup %612 }
  0x8c   : > { %v304_v11 = vmul.f32 0.6931472, %v613_v9  ;;  %v305_v12 = vadd.f32 %v302_v7, %v269_v19 }
  0x8e   : > { %v306_v16 = vadd.f32 %v304_v11, %v276_v22  ;;  %v361_v17 = vsub.f32 %v305_v12, %v328_v8 }
  0x90   : > { %v362_v18 = vsub.f32 %v306_v16, %v335_v13  ;;  %v363_v20 = vsel %vm356_vm4, %v361_v17, 0.0 }
  0x92   : > { %v364_v25 = vsel %vm357_vm5, %v362_v18, 0.0 }
  0x93   : > { %v367_v26 = vcombine.low %v363_v20, %v364_v25 }
  0x95   : > { %v374_v27 = vrot.slane %v367_v26, %v373_v21 }
  0x97   : > { %v381_v29 = vrot.slane %v374_v27, %v373_v21 }
  0x99   : > { %v383_v30 = vadd.f32 %v381_v29, %v360_v28 }
  0x9b   : > { %388 = vst.msk [vmem:[#allocation2] sm:$0x3] %vm894_vm0, %v383_v30 }
  0xa2   : > { %v392_v19 = vld [vmem:[#allocation2] sm:$0x3] }
  0xa3   : > { %v397_v22 = vrot.slane %v392_v19, %v905_v23  ;;  %v401_v31 = vrot.slane %v392_v19, %v908_v24 }
  0xa5   : > { %v405_v32 = vsel %vm404_vm6, %v397_v22, 0.0  ;;  %v406_v33 = vsel %vm404_vm6, %v401_v31, 0.0 }
  0xa6   : > { %v407_v14 = vadd.f32 %v406_v33, %v405_v32 }
  0xa8   : > { %408 = vadd.xlane.f32.xlu0 %v407_v14 }
 0x135   : > { %v409_v34 = vpop.xlane.xlu0 %408 }
 0x136   : > { %v410_v35 = vrot.slane %v409_v34, 4 }
 0x138   : > { %v411_v36 = vadd.f32 %v410_v35, %v409_v34 }
 0x13a   : > { %v412_v37 = vrot.slane %v411_v36, 2 }
 0x13c   : > { %v413_v38 = vadd.f32 %v412_v37, %v411_v36 }
 0x13e   : > { %v414_v39 = vrot.slane %v413_v38, 1 }
 0x140   : > { %v415_v1 = vadd.f32 %v414_v39, %v413_v38 }
 0x142   : > { %541 = vpush %v415_v1 }
 0x173   : > { %s542_s6 = spop %541 }
 0x174   : > { %v417_v23 = vstv %s542_s6 }
 0x175   : > { %419 = vst.msk [vmem:[%s236_s4] sm:$0x1] %vm418_vm7, %v417_v23 }
 0x176 PF: > { %s18_s14 = sadd.s32 1, %s728_s14   ;;  %s962_s9 = smov %s712_s10 }
 0x177   : > { %p15_p9 = scmp.ge.s32.totalorder %s18_s14, 4   ;;  %s963_s10 = smov %s716_s11 }
 0x178   : > { %s964_s11 = smov %s800_s21  ;;  %s965_s12 = smov %s724_s13 }
 0x179   : > { %s966_s13 = smov %s968_s16  ;;  %17 = sbr.rel (!%p15_p9) target bundleno = 6 (0x6), region = 89 }
 0x180   :  { %440 = vsyncpa [#allocation5], 1 }
 0x181   :  { %442 = vsyncpa [#allocation5 + $0x1], 1 }
 0x182   :  { %443 = vsyncpa [#allocation7], 1 }
 0x183   :  { %445 = vsyncpa [#allocation7 + $0x1], 1 }

</bundles_post_ra>
